<compile_context>
chip_gen: v6e
topology: v6e:2x2x1
jax: 0.10.0
libtpu: 0.0.40
codegen_flags: <defaults>
</compile_context>

<pallas_src>
import functools

import numpy as np
import jax
import jax.numpy as jnp
from jax.experimental import pallas as pl
from jax.experimental.pallas import tpu as pltpu

P = 128            # lane-dense feature padding (TPU lane width)
MIN_GRID_STEPS = 4 # >= 2 grid steps per TensorCore on v7x (2 TCs), >= 4 on v5e/v6e


def _round_up(x, m):
    return ((x + m - 1) // m) * m


def _fused_mlp_kernel(x_ref, w_ref, b_ref, o_ref, *, n_layers, in_dim):
    """Whole MLP on one batch tile.

    x_ref: (tm, in_dim) f32   w_ref: (L, P, P) bf16   b_ref: (L, 1, P) f32
    o_ref: (tm, P) f32
    """
    h = x_ref[...].astype(jnp.bfloat16)                 # (tm, in_dim) bf16
    for l in range(n_layers):                           # static unroll, L is tiny
        if l == 0 and in_dim != P:
            # Only the first in_dim rows of layer 0's padded weight matter.
            w_l = w_ref[0, :in_dim, :]                  # (in_dim, P) bf16
        else:
            w_l = w_ref[l]                              # (P, P) bf16, VMEM-resident
        acc = jnp.dot(h, w_l,
                      preferred_element_type=jnp.float32)   # MXU, f32 accumulate
        acc = acc + b_ref[l]                            # (1, P) f32 bias broadcast
        if l < n_layers - 1:
            # ReLU on hidden layers; Dropout(p=0.2) -> identity in eval mode.
            h = jnp.maximum(acc, 0.0).astype(jnp.bfloat16)  # carry bf16 activation
        else:
            o_ref[...] = acc.astype(o_ref.dtype)


def init_jojo_mlp_params(key, size_list):
    """Deterministic init mimicking torch.nn.Linear default U(-1/sqrt(in), 1/sqrt(in)).

    Weights stored as [in_features, out_features] so the kernel computes x @ W + b.
    """
    params = []
    for i in range(len(size_list) - 1):
        fan_in, fan_out = size_list[i], size_list[i + 1]
        key, kw, kb = jax.random.split(key, 3)
        bound = 1.0 / np.sqrt(fan_in)
        w = jax.random.uniform(kw, (fan_in, fan_out), jnp.float32, -bound, bound)
        b = jax.random.uniform(kb, (fan_out,), jnp.float32, -bound, bound)
        params.append((w, b))
    return params


def pack_params(params):
    """Zero-pad every layer to (P, P) / (1, P) and stack into two packed operands."""
    n_layers = len(params)
    w_packed = jnp.zeros((n_layers, P, P), jnp.float32)
    b_packed = jnp.zeros((n_layers, 1, P), jnp.float32)
    for l, (w, b) in enumerate(params):
        k, n = w.shape
        w_packed = w_packed.at[l, :k, :n].set(w)
        b_packed = b_packed.at[l, 0, :n].set(b)
    # bf16 weights: native MXU dtype on v5e/v6e/v7x, halves weight DMA bytes.
    # NOTE: composed bf16 matmuls over L layers differ from torch f32 by ~1e-2 rel.
    return w_packed.astype(jnp.bfloat16), b_packed


@functools.partial(jax.jit, static_argnames=("out_dim", "block_m"))
def jojo_mlp_forward(x, w_packed, b_packed, out_dim, block_m=512):
    """Fused forward pass (eval mode). Returns f32; the `.double()` cast is done on host."""
    batch, in_dim = x.shape
    n_layers = w_packed.shape[0]

    # Batch tiling: start from the largest multiple-of-8 tile (<= block_m), then
    # shrink until the grid has >= MIN_GRID_STEPS steps (so both v7x cores get
    # >= 2 steps and the software pipeline overlaps DMA with compute).
    tm = min(block_m, _round_up(batch, 8))
    while tm > 8 and pl.cdiv(batch, tm) < MIN_GRID_STEPS:
        tm = max(8, _round_up(tm // 2, 8))
    b_pad = _round_up(batch, tm)
    grid = (b_pad // tm,)

    # No lane padding of x (saves a 4x-inflated HBM round trip); only pad batch
    # rows if batch isn't a multiple of the tile (garbage rows are sliced off).
    x_f32 = x.astype(jnp.float32)
    if b_pad != batch:
        x_f32 = jnp.pad(x_f32, ((0, b_pad - batch), (0, 0)))

    kernel = functools.partial(_fused_mlp_kernel, n_layers=n_layers, in_dim=in_dim)

    # Scheduling hint for XLA around the custom call (latency-dominated kernel).
    flops = 2 * b_pad * (in_dim * P + (n_layers - 1) * P * P)
    bytes_accessed = (b_pad * in_dim * 4          # x
                      + n_layers * P * P * 2      # bf16 weights
                      + n_layers * P * 4          # f32 biases
                      + b_pad * P * 4)            # output slab

    # Static VMEM budget (double-buffered operands + activation headroom).
    vmem_bytes = (2 * tm * in_dim * 4             # input tile
                  + 2 * tm * P * 4                # output tile
                  + 2 * n_layers * P * P * 2      # packed weights
                  + 2 * n_layers * P * 4          # packed biases
                  + 4 * tm * P * 4)               # live activations / accumulators
    vmem_limit = None if vmem_bytes < (30 << 20) else min(2 * vmem_bytes, 128 << 20)

    out = pl.pallas_call(
        kernel,
        out_shape=jax.ShapeDtypeStruct((b_pad, P), jnp.float32),
        grid=grid,
        in_specs=[
            pl.BlockSpec((tm, in_dim), lambda i: (i, 0)),          # batch-tiled input (no lane pad)
            pl.BlockSpec((n_layers, P, P), lambda i: (0, 0, 0)),   # weights stay resident
            pl.BlockSpec((n_layers, 1, P), lambda i: (0, 0, 0)),   # biases stay resident
        ],
        out_specs=pl.BlockSpec((tm, P), lambda i: (i, 0)),         # lane-dense output
        compiler_params=pltpu.CompilerParams(
            dimension_semantics=("parallel",),                     # shard batch tiles across TCs
            vmem_limit_bytes=vmem_limit),
        cost_estimate=pl.CostEstimate(flops=flops, transcendentals=0,
                                      bytes_accessed=bytes_accessed),
    )(x_f32, w_packed, b_packed)

    return out[:batch, :out_dim]


if __name__ == "__main__":
    # MLP over flat feature vectors: in_dim, hidden, hidden, out_dim.
    size_list = [32, 64, 64, 16]
    batch = 512  # tm=128, grid=(4,): >=2 pipelined steps per v7x core, 4 on v5e/v6e

    key = jax.random.PRNGKey(0)
    key, kx = jax.random.split(key)
    x = jax.random.normal(kx, (batch, size_list[0]), jnp.float32)

    params = init_jojo_mlp_params(key, size_list)
    w_packed, b_packed = pack_params(params)

    out_f32 = jojo_mlp_forward(x, w_packed, b_packed, out_dim=size_list[-1])
    out_f32 = jax.block_until_ready(out_f32)

    # `.double()` from the torch forward: cast on host (no native f64 on TPU,
    # and it adds no precision to an f32-computed result).
    out = np.asarray(out_f32, dtype=np.float64)

    assert out.shape == (batch, size_list[-1])
    assert out.dtype == np.float64
    assert np.isfinite(out).all()
    print("KERNEL_OK")
</pallas_src>

<mosaic_0001>
module attributes {stable_mosaic.version = 11 : i64} {
  func.func @_fused_mlp_kernel(%arg0: i32, %arg1: memref<128x32xf32, #tpu.memory_space<vmem>>, %arg2: memref<3x128x128xbf16, #tpu.memory_space<vmem>>, %arg3: memref<3x1x128xf32, #tpu.memory_space<vmem>>, %arg4: memref<128x128xf32, #tpu.memory_space<vmem>>) attributes {dimension_semantics = [#tpu.dimension_semantics<parallel>], iteration_bounds = array<i64: 4>, scalar_prefetch = 0 : i64, scratch_operands = 0 : i64, tpu.core_type = #tpu.core_type<tc>, window_params = [{transform_indices = @transform_0, window_bounds = array<i64: 128, 32>}, {pipeline_mode = #tpu.pipeline_mode<synchronous>, transform_indices = @transform_1, window_bounds = array<i64: 3, 128, 128>}, {pipeline_mode = #tpu.pipeline_mode<synchronous>, transform_indices = @transform_2, window_bounds = array<i64: 3, 1, 128>}, {transform_indices = @transform_3, window_bounds = array<i64: 128, 128>}]} {
    %c0 = arith.constant 0 : index
    %c0_0 = arith.constant 0 : index
    %0 = vector.load %arg1[%c0, %c0_0] : memref<128x32xf32, #tpu.memory_space<vmem>>, vector<128x32xf32>
    %1 = arith.truncf %0 : vector<128x32xf32> to vector<128x32xbf16>
    %c0_1 = arith.constant 0 : index
    %c0_2 = arith.constant 0 : index
    %c0_3 = arith.constant 0 : index
    %2 = vector.load %arg2[%c0_1, %c0_2, %c0_3] : memref<3x128x128xbf16, #tpu.memory_space<vmem>>, vector<1x32x128xbf16>
    %3 = vector.shape_cast %2 : vector<1x32x128xbf16> to vector<32x128xbf16>
    %cst = arith.constant dense<0.000000e+00> : vector<128x128xf32>
    %4 = tpu.matmul %1, %3, %cst {dimension_numbers = #tpu.dot_dimension_numbers<[1], [0], [0], [1], [0, 0, 1, 1], [], []>} : vector<128x32xbf16>, vector<32x128xbf16>, vector<128x128xf32> -> vector<128x128xf32>
    %c0_4 = arith.constant 0 : index
    %c0_5 = arith.constant 0 : index
    %c0_6 = arith.constant 0 : index
    %5 = vector.load %arg3[%c0_4, %c0_5, %c0_6] : memref<3x1x128xf32, #tpu.memory_space<vmem>>, vector<1x1x128xf32>
    %6 = vector.shape_cast %5 : vector<1x1x128xf32> to vector<1x128xf32>
    %7 = vector.broadcast %6 : vector<1x128xf32> to vector<128x128xf32>
    %8 = arith.addf %4, %7 : vector<128x128xf32>
    %cst_7 = arith.constant 0.000000e+00 : f32
    %9 = vector.broadcast %cst_7 : f32 to vector<128x128xf32>
    %10 = arith.maximumf %8, %9 : vector<128x128xf32>
    %11 = arith.truncf %10 : vector<128x128xf32> to vector<128x128xbf16>
    %c1 = arith.constant 1 : index
    %c0_8 = arith.constant 0 : index
    %c0_9 = arith.constant 0 : index
    %12 = vector.load %arg2[%c1, %c0_8, %c0_9] : memref<3x128x128xbf16, #tpu.memory_space<vmem>>, vector<1x128x128xbf16>
    %13 = vector.shape_cast %12 : vector<1x128x128xbf16> to vector<128x128xbf16>
    %cst_10 = arith.constant dense<0.000000e+00> : vector<128x128xf32>
    %14 = tpu.matmul %11, %13, %cst_10 {dimension_numbers = #tpu.dot_dimension_numbers<[1], [0], [0], [1], [0, 0, 1, 1], [], []>} : vector<128x128xbf16>, vector<128x128xbf16>, vector<128x128xf32> -> vector<128x128xf32>
    %c1_11 = arith.constant 1 : index
    %c0_12 = arith.constant 0 : index
    %c0_13 = arith.constant 0 : index
    %15 = vector.load %arg3[%c1_11, %c0_12, %c0_13] : memref<3x1x128xf32, #tpu.memory_space<vmem>>, vector<1x1x128xf32>
    %16 = vector.shape_cast %15 : vector<1x1x128xf32> to vector<1x128xf32>
    %17 = vector.broadcast %16 : vector<1x128xf32> to vector<128x128xf32>
    %18 = arith.addf %14, %17 : vector<128x128xf32>
    %cst_14 = arith.constant 0.000000e+00 : f32
    %19 = vector.broadcast %cst_14 : f32 to vector<128x128xf32>
    %20 = arith.maximumf %18, %19 : vector<128x128xf32>
    %21 = arith.truncf %20 : vector<128x128xf32> to vector<128x128xbf16>
    %c2 = arith.constant 2 : index
    %c0_15 = arith.constant 0 : index
    %c0_16 = arith.constant 0 : index
    %22 = vector.load %arg2[%c2, %c0_15, %c0_16] : memref<3x128x128xbf16, #tpu.memory_space<vmem>>, vector<1x128x128xbf16>
    %23 = vector.shape_cast %22 : vector<1x128x128xbf16> to vector<128x128xbf16>
    %cst_17 = arith.constant dense<0.000000e+00> : vector<128x128xf32>
    %24 = tpu.matmul %21, %23, %cst_17 {dimension_numbers = #tpu.dot_dimension_numbers<[1], [0], [0], [1], [0, 0, 1, 1], [], []>} : vector<128x128xbf16>, vector<128x128xbf16>, vector<128x128xf32> -> vector<128x128xf32>
    %c2_18 = arith.constant 2 : index
    %c0_19 = arith.constant 0 : index
    %c0_20 = arith.constant 0 : index
    %25 = vector.load %arg3[%c2_18, %c0_19, %c0_20] : memref<3x1x128xf32, #tpu.memory_space<vmem>>, vector<1x1x128xf32>
    %26 = vector.shape_cast %25 : vector<1x1x128xf32> to vector<1x128xf32>
    %27 = vector.broadcast %26 : vector<1x128xf32> to vector<128x128xf32>
    %28 = arith.addf %24, %27 : vector<128x128xf32>
    %c0_21 = arith.constant 0 : index
    %c0_22 = arith.constant 0 : index
    %29 = vector.load %arg4[%c0_21, %c0_22] : memref<128x128xf32, #tpu.memory_space<vmem>>, vector<128x128xf32>
    tpu.vector_store %arg4[%c0_21, %c0_22], %28 {strides = array<i32>} : memref<128x128xf32, #tpu.memory_space<vmem>>, vector<128x128xf32>,
    return
  }
  func.func @transform_0(%arg0: i32) -> (i32, i32) {
    %c0_i32 = arith.constant 0 : i32
    %c0_i32_0 = arith.constant 0 : i32
    return %arg0, %c0_i32 : i32, i32
  }
  func.func @transform_1(%arg0: i32) -> (i32, i32, i32) {
    %c0_i32 = arith.constant 0 : i32
    %c0_i32_0 = arith.constant 0 : i32
    %c0_i32_1 = arith.constant 0 : i32
    %c0_i32_2 = arith.constant 0 : i32
    return %c0_i32, %c0_i32_0, %c0_i32_1 : i32, i32, i32
  }
  func.func @transform_2(%arg0: i32) -> (i32, i32, i32) {
    %c0_i32 = arith.constant 0 : i32
    %c0_i32_0 = arith.constant 0 : i32
    %c0_i32_1 = arith.constant 0 : i32
    %c0_i32_2 = arith.constant 0 : i32
    return %c0_i32, %c0_i32_0, %c0_i32_1 : i32, i32, i32
  }
  func.func @transform_3(%arg0: i32) -> (i32, i32) {
    %c0_i32 = arith.constant 0 : i32
    %c0_i32_0 = arith.constant 0 : i32
    return %arg0, %c0_i32 : i32, i32
  }
}

</mosaic_0001>

<bundles_post_ra>
// kernel: jojo_mlp_forward.1
= control target key start
LH: loop header
LB: loop body
LE: loop exit
PB: predicated region body
PF: predicated region fallthrough
CT: control target
= control target key end

     0   :  { %s1058_s12 = smov 0   ;;  %s1189_s0 = inlined_call_operand.vmem [shape: f32[512,32], index: 0, kind: input, shape index: {}]   ;;  %s1190_s1 = inlined_call_operand.vmem [shape: bf16[3,128,128], index: 1, kind: input, shape index: {}]   ;;  %s1191_s2 = inlined_call_operand.vmem [shape: f32[3,1,128], index: 2, kind: input, shape index: {}]   ;;  %s1192_s3 = inlined_call_operand.vmem [shape: f32[512,128], index: 3, kind: output, shape index: {}]  }
   0x1 LB: > { %s804_s13 = sadd.s32 4294967295, %s1036_s12   ;;  %p808_p0 = scmp.ge.s32.totalorder %s1036_s12, 1  ;;  %s1036_s12 = sphi %s1058_s12, %s13_s12  }
   0x2   : > { %p138_p1 = scmp.lt.s32.totalorder %s1036_s12, 5 }
   0x4   : > { %p139_p2 = pnand %p808_p0, %p138_p1 }
   0x5   : > { %s809_s16 = sshll.u32 (!%p139_p2), %s804_s13, 4 }
   0x6   : > { %142 = sbr.rel (%p139_p2) target bundleno = 658 (0x292), region = 32  ;;  %p163_p3 = scmp.lt.s32.totalorder (!%p139_p2), %s809_s16, 63 }
   0xb   : > { %v1012_v0 = vld [vmem:[%s1190_s1 + $0x8] sm:$0xff]   ;;  %v1013_v1 = vld [vmem:[%s1190_s1] sm:$0xff]   ;;  %v1014_v2 = vld [vmem:[%s1190_s1 + $0x78] sm:$0xff]   ;;  %s1194_s16 = smov (!%p163_p3, %s809_s16), 63  ;;  %vm222_vm0 = vcmask 261120  }
   0xc   : > { %920 = vmatprep.subr.bf16.mxu0 %v1012_v0  ;;  %v1015_v3 = vld [vmem:[%s1190_s1 + $0x70] sm:$0xff]   ;;  %940 = vmatprep.subr.bf16.mxu1 %v1014_v2  ;;  %s810_s23 = sshll.u32 %s1194_s16, 3  ;;  %v1016_v4 = vld [vmem:[%s1190_s1 + $0x68] sm:$0xff]   ;;  %v1017_v14 = vld [vmem:[%s1190_s1 + $0x60] sm:$0xff]  }
   0xd   : > { %921 = vmatpush3.bf16.msra.mxu0 %v1012_v0  ;;  %941 = vmatpush3.bf16.msra.mxu1 %v1014_v2  ;;  %s1086_s26 = scalar_lea.vmem %s1189_s0, %s810_s23  ;;  %v1018_v19 = vld [vmem:[%s1190_s1 + $0x58] sm:$0xff]   ;;  %v1019_v31 = vld [vmem:[%s1190_s1 + $0x50] sm:$0xff]   ;;  %v1020_v32 = vld [vmem:[%s1190_s1 + $0x48] sm:$0xff]   ;;  %s1168_s13 = scalar_lea.vmem %s1192_s3, %s810_s23 }
   0xe   : > { %922 = vmatprep.subr.bf16.mxu0 %v1013_v1  ;;  %942 = vmatprep.subr.bf16.mxu1 %v1015_v3  ;;  %v175_v5 = vld [vmem:[%s1086_s26] sm:$0xff]  ;;  %v176_v6 = vld [vmem:[%s1086_s26 + $0x8] sm:$0xff]  ;;  %v177_v7 = vld [vmem:[%s1086_s26 + $0x10] sm:$0xff] }
   0xf   : > { %v191_v8 = vpack.c.bf16 %v176_v6, %v175_v5  ;;  %v178_v9 = vld [vmem:[%s1086_s26 + $0x18] sm:$0xff]  ;;  %v179_v10 = vld [vmem:[%s1086_s26 + $0x20] sm:$0xff]  ;;  %v180_v11 = vld [vmem:[%s1086_s26 + $0x28] sm:$0xff] }
  0x10   : > { %v192_v12 = vpack.c.bf16 %v178_v9, %v177_v7  ;;  %v193_v13 = vpack.c.bf16 %v180_v11, %v179_v10  ;;  %v181_v15 = vld [vmem:[%s1086_s26 + $0x30] sm:$0xff]  ;;  %v182_v16 = vld [vmem:[%s1086_s26 + $0x38] sm:$0xff]  ;;  %v183_v17 = vld [vmem:[%s1086_s26 + $0x40] sm:$0xff] }
  0x11   : > { %923 = vmatpush3.bf16.msra.mxu0 %v1013_v1  ;;  %943 = vmatpush3.bf16.msra.mxu1 %v1015_v3  ;;  %v184_v18 = vld [vmem:[%s1086_s26 + $0x48] sm:$0xff]  ;;  %v194_v20 = vpack.c.bf16 %v182_v16, %v181_v15  ;;  %v185_v22 = vld [vmem:[%s1086_s26 + $0x50] sm:$0xff]  ;;  %v186_v23 = vld [vmem:[%s1086_s26 + $0x58] sm:$0xff] }
  0x12   : > { %924 = vmatprep.mubr.msk.bf16.mxu0 %vm222_vm0, %v191_v8  ;;  %944 = vmatprep.subr.bf16.mxu1 %v1016_v4  ;;  %v195_v21 = vpack.c.bf16 %v184_v18, %v183_v17  ;;  %v187_v24 = vld [vmem:[%s1086_s26 + $0x60] sm:$0xff]  ;;  %v188_v25 = vld [vmem:[%s1086_s26 + $0x68] sm:$0xff]  ;;  %v196_v26 = vpack.c.bf16 %v186_v23, %v185_v22  ;;  %v189_v28 = vld [vmem:[%s1086_s26 + $0x70] sm:$0xff] }
  0x13   : > { %v197_v27 = vpack.c.bf16 %v188_v25, %v187_v24  ;;  %v190_v29 = vld [vmem:[%s1086_s26 + $0x78] sm:$0xff]  ;;  %v1021_v33 = vld [vmem:[%s1190_s1 + $0x40] sm:$0xff]   ;;  %v1023_v35 = vld [vmem:[%s1190_s1 + $0xb0] sm:$0xff]  }
  0x14   : > { %925 = vmatmul.mubr.msk.bf16.vlgmr.msra.gmra.mxu0 %vm222_vm0, %v192_v12  ;;  %v198_v30 = vpack.c.bf16 %v190_v29, %v189_v28  ;;  %v1022_v34 = vld [vmem:[%s1190_s1 + $0xb8] sm:$0xff]   ;;  %v1024_v36 = vld [vmem:[%s1190_s1 + $0xa8] sm:$0xff]   ;;  %v1025_v37 = vld [vmem:[%s1190_s1 + $0xa0] sm:$0xff]  }
  0x15   : > { %928 = vmatprep.mubr.msk.bf16.mxu0 %vm222_vm0, %v193_v13  ;;  %945 = vmatpush3.bf16.msra.mxu1 %v1016_v4  ;;  %v1026_v38 = vld [vmem:[%s1190_s1 + $0x98] sm:$0xff]   ;;  %v813_v41 = vld [vmem:[%s1191_s2] ss:$0 sm:$0xff] }
  0x16   : > { %946 = vmatprep.subr.bf16.mxu1 %v1017_v14  ;;  %972 = vmatprep.subr.bf16.mxu0 %v1022_v34 }
  0x17   : > { %973 = vmatpush3.bf16.msra.mxu0 %v1022_v34  ;;  %v1029_v34 = vld [vmem:[%s1190_s1 + $0x80] sm:$0xff]  }
  0x18   : > { %974 = vmatprep.subr.bf16.mxu0 %v1023_v35 }
  0x19   : > { %947 = vmatpush3.bf16.msra.mxu1 %v1017_v14 }
  0x1a   : > { %948 = vmatprep.subr.bf16.mxu1 %v1018_v19 }
  0x1b   : > { %975 = vmatpush3.bf16.msra.mxu0 %v1023_v35 }
  0x1c   : > { %929 = vmatmul.mubr.msk.bf16.gmra.mxu0 %vm222_vm0, %v194_v20  ;;  %976 = vmatprep.subr.bf16.mxu0 %v1024_v36 }
  0x1d   : > { %932 = vmatprep.mubr.msk.bf16.mxu0 %vm222_vm0, %v195_v21  ;;  %949 = vmatpush3.bf16.msra.mxu1 %v1018_v19 }
  0x1e   : > { %950 = vmatprep.subr.bf16.mxu1 %v1019_v31 }
  0x1f   : > { %977 = vmatpush3.bf16.msra.mxu0 %v1024_v36 }
  0x20   : > { %978 = vmatprep.subr.bf16.mxu0 %v1025_v37 }
  0x21   : > { %951 = vmatpush3.bf16.msra.mxu1 %v1019_v31 }
  0x22   : > { %952 = vmatprep.subr.bf16.mxu1 %v1020_v32 }
  0x23   : > { %979 = vmatpush3.bf16.msra.mxu0 %v1025_v37  ;;  %v841_v37 = vld [vmem:[%s1191_s2 + $0x1] ss:$0 sm:$0xff] }
  0x24   : > { %933 = vmatmul.mubr.msk.bf16.gmra.mxu0 %vm222_vm0, %v196_v26  ;;  %980 = vmatprep.subr.bf16.mxu0 %v1026_v38 }
  0x25   : > { %936 = vmatprep.mubr.msk.bf16.mxu0 %vm222_vm0, %v197_v27  ;;  %953 = vmatpush3.bf16.msra.mxu1 %v1020_v32  ;;  %v1027_v32 = vld [vmem:[%s1190_s1 + $0x90] sm:$0xff]  }
  0x26   : > { %954 = vmatprep.subr.bf16.mxu1 %v1021_v33 }
  0x27   : > { %981 = vmatpush3.bf16.msra.mxu0 %v1026_v38 }
  0x28   : > { %982 = vmatprep.subr.bf16.mxu0 %v1027_v32 }
  0x29   : > { %955 = vmatpush3.bf16.msra.mxu1 %v1021_v33  ;;  %v1028_v33 = vld [vmem:[%s1190_s1 + $0x88] sm:$0xff]  }
  0x2b   : > { %983 = vmatpush3.bf16.msra.mxu0 %v1027_v32 }
  0x2c   : > { %937 = vmatmul.mubr.msk.bf16.gmra.mxu0 %vm222_vm0, %v198_v30  ;;  %984 = vmatprep.subr.bf16.mxu0 %v1028_v33 }
  0x2f   : > { %985 = vmatpush3.bf16.msra.mxu0 %v1028_v33 }
  0x30   : > { %986 = vmatprep.subr.bf16.mxu0 %v1029_v34 }
  0x33   : > { %987 = vmatpush3.bf16.msra.mxu0 %v1029_v34 }
  0xd4   : > { %v926_v39 = vpop.f32.mrf.mxu0 }
  0xd5   : > { %v290_v45 = vadd.f32 %v926_v39, %v813_v41 }
  0xd6   : > { %v281_v40 = vpop.f32.mrf.mxu0 }
  0xd7   : > { %v282_v43 = vadd.f32 %v813_v41, %v281_v40  ;;  %v346_v52 = vmax.f32 %v290_v45, 0.0 }
  0xd8   : > { %v927_v42 = vpop.f32.mrf.mxu0 }
  0xd9   : > { %v293_v44 = vadd.f32 %v927_v42, %v813_v41  ;;  %v344_v50 = vmax.f32 %v282_v43, 0.0 }
  0xda   : > { %v284_v46 = vpop.f32.mrf.mxu0 }
  0xdb   : > { %v285_v47 = vadd.f32 %v813_v41, %v284_v46  ;;  %v347_v48 = vmax.f32 %v293_v44, 0.0 }
  0xdc   : > { %v930_v49 = vpop.f32.mrf.mxu0 }
  0xdd   : > { %v345_v51 = vmax.f32 %v285_v47, 0.0  ;;  %v361_v55 = vpack.c.bf16 %v347_v48, %v346_v52  ;;  %v306_v59 = vadd.f32 %v930_v49, %v813_v41 }
  0xde   : > { %v297_v53 = vpop.f32.mrf.mxu0 }
  0xdf   : > { %v360_v54 = vpack.c.bf16 %v345_v51, %v344_v50  ;;  %v298_v57 = vadd.f32 %v813_v41, %v297_v53  ;;  %v350_v2 = vmax.f32 %v306_v59, 0.0 }
  0xe0   : > { %v931_v56 = vpop.f32.mrf.mxu0 }
  0xe1   : > { %v309_v58 = vadd.f32 %v931_v56, %v813_v41  ;;  %956 = vmatprep.mubr.bf16.mxu1 %v360_v54  ;;  %v348_v0 = vmax.f32 %v298_v57, 0.0 }
  0xe2   : > { %v300_v60 = vpop.f32.mrf.mxu0  ;;  %957 = vmatmul.mubr.bf16.vlgmr.msra.gmra.mxu1 %v361_v55 }
  0xe3   : > { %v301_v61 = vadd.f32 %v813_v41, %v300_v60  ;;  %v351_v62 = vmax.f32 %v309_v58, 0.0 }
  0xe4   : > { %v934_v63 = vpop.f32.mrf.mxu0 }
  0xe5   : > { %v349_v1 = vmax.f32 %v301_v61, 0.0  ;;  %v363_v5 = vpack.c.bf16 %v351_v62, %v350_v2  ;;  %v322_v9 = vadd.f32 %v934_v63, %v813_v41 }
  0xe6   : > { %v313_v3 = vpop.f32.mrf.mxu0 }
  0xe7   : > { %v362_v4 = vpack.c.bf16 %v349_v1, %v348_v0  ;;  %v314_v7 = vadd.f32 %v813_v41, %v313_v3  ;;  %v354_v16 = vmax.f32 %v322_v9, 0.0 }
  0xe8   : > { %v935_v6 = vpop.f32.mrf.mxu0 }
  0xe9   : > { %v325_v8 = vadd.f32 %v935_v6, %v813_v41  ;;  %960 = vmatprep.mubr.bf16.mxu1 %v362_v4  ;;  %v352_v14 = vmax.f32 %v314_v7, 0.0 }
  0xea   : > { %v316_v10 = vpop.f32.mrf.mxu0  ;;  %961 = vmatmul.mubr.bf16.gmra.mxu1 %v363_v5 }
  0xeb   : > { %v317_v11 = vadd.f32 %v813_v41, %v316_v10  ;;  %v355_v12 = vmax.f32 %v325_v8, 0.0 }
  0xec   : > { %v938_v13 = vpop.f32.mrf.mxu0 }
  0xed   : > { %v353_v15 = vmax.f32 %v317_v11, 0.0  ;;  %v365_v19 = vpack.c.bf16 %v355_v12, %v354_v16  ;;  %v338_v23 = vadd.f32 %v938_v13, %v813_v41 }
  0xee   : > { %v329_v17 = vpop.f32.mrf.mxu0 }
  0xef   : > { %v364_v18 = vpack.c.bf16 %v353_v15, %v352_v14  ;;  %v330_v21 = vadd.f32 %v813_v41, %v329_v17  ;;  %v358_v29 = vmax.f32 %v338_v23, 0.0 }
  0xf0   : > { %v939_v20 = vpop.f32.mrf.mxu0 }
  0xf1   : > { %v341_v22 = vadd.f32 %v939_v20, %v813_v41  ;;  %964 = vmatprep.mubr.bf16.mxu1 %v364_v18  ;;  %v356_v27 = vmax.f32 %v330_v21, 0.0 }
  0xf2   : > { %v332_v24 = vpop.f32.mrf.mxu0  ;;  %965 = vmatmul.mubr.bf16.gmra.mxu1 %v365_v19 }
  0xf3   : > { %v333_v25 = vadd.f32 %v813_v41, %v332_v24  ;;  %v359_v26 = vmax.f32 %v341_v22, 0.0 }
  0xf5   : > { %v357_v28 = vmax.f32 %v333_v25, 0.0  ;;  %v367_v31 = vpack.c.bf16 %v359_v26, %v358_v29 }
  0xf7   : > { %v366_v30 = vpack.c.bf16 %v357_v28, %v356_v27  ;;  %v867_v28 = vld [vmem:[%s1191_s2 + $0x2] ss:$0 sm:$0xff] }
  0xf9   : > { %968 = vmatprep.mubr.bf16.mxu1 %v366_v30 }
  0xfa   : > { %969 = vmatmul.mubr.bf16.gmra.mxu1 %v367_v31 }
 0x1a2   : > { %v958_v35 = vpop.f32.mrf.mxu1 }
 0x1a3   : > { %v484_v41 = vadd.f32 %v958_v35, %v841_v37 }
 0x1a4   : > { %v475_v36 = vpop.f32.mrf.mxu1 }
 0x1a5   : > { %v476_v39 = vadd.f32 %v841_v37, %v475_v36  ;;  %v540_v48 = vmax.f32 %v484_v41, 0.0 }
 0x1a6   : > { %v959_v38 = vpop.f32.mrf.mxu1 }
 0x1a7   : > { %v487_v40 = vadd.f32 %v959_v38, %v841_v37  ;;  %v538_v46 = vmax.f32 %v476_v39, 0.0 }
 0x1a8   : > { %v478_v42 = vpop.f32.mrf.mxu1 }
 0x1a9   : > { %v479_v43 = vadd.f32 %v841_v37, %v478_v42  ;;  %v541_v44 = vmax.f32 %v487_v40, 0.0 }
 0x1aa   : > { %v962_v45 = vpop.f32.mrf.mxu1 }
 0x1ab   : > { %v539_v47 = vmax.f32 %v479_v43, 0.0  ;;  %v555_v51 = vpack.c.bf16 %v541_v44, %v540_v48  ;;  %v500_v55 = vadd.f32 %v962_v45, %v841_v37 }
 0x1ac   : > { %v491_v49 = vpop.f32.mrf.mxu1 }
 0x1ad   : > { %v554_v50 = vpack.c.bf16 %v539_v47, %v538_v46  ;;  %v492_v53 = vadd.f32 %v841_v37, %v491_v49  ;;  %v544_v62 = vmax.f32 %v500_v55, 0.0 }
 0x1ae   : > { %v963_v52 = vpop.f32.mrf.mxu1 }
 0x1af   : > { %v503_v54 = vadd.f32 %v963_v52, %v841_v37  ;;  %988 = vmatprep.mubr.bf16.mxu0 %v554_v50  ;;  %v542_v60 = vmax.f32 %v492_v53, 0.0 }
 0x1b0   : > { %v494_v56 = vpop.f32.mrf.mxu1  ;;  %989 = vmatmul.mubr.bf16.vlgmr.msra.gmra.mxu0 %v555_v51 }
 0x1b1   : > { %v495_v57 = vadd.f32 %v841_v37, %v494_v56  ;;  %v545_v58 = vmax.f32 %v503_v54, 0.0 }
 0x1b2   : > { %v966_v59 = vpop.f32.mrf.mxu1 }
 0x1b3   : > { %v543_v61 = vmax.f32 %v495_v57, 0.0  ;;  %v557_v1 = vpack.c.bf16 %v545_v58, %v544_v62  ;;  %v516_v5 = vadd.f32 %v966_v59, %v841_v37 }
 0x1b4   : > { %v507_v63 = vpop.f32.mrf.mxu1 }
 0x1b5   : > { %v556_v0 = vpack.c.bf16 %v543_v61, %v542_v60  ;;  %v508_v3 = vadd.f32 %v841_v37, %v507_v63  ;;  %v548_v12 = vmax.f32 %v516_v5, 0.0 }
 0x1b6   : > { %v967_v2 = vpop.f32.mrf.mxu1 }
 0x1b7   : > { %v519_v4 = vadd.f32 %v967_v2, %v841_v37  ;;  %992 = vmatprep.mubr.bf16.mxu0 %v556_v0  ;;  %v546_v10 = vmax.f32 %v508_v3, 0.0 }
 0x1b8   : > { %v510_v6 = vpop.f32.mrf.mxu1  ;;  %993 = vmatmul.mubr.bf16.gmra.mxu0 %v557_v1 }
 0x1b9   : > { %v511_v7 = vadd.f32 %v841_v37, %v510_v6  ;;  %v549_v8 = vmax.f32 %v519_v4, 0.0 }
 0x1ba   : > { %v970_v9 = vpop.f32.mrf.mxu1 }
 0x1bb   : > { %v547_v11 = vmax.f32 %v511_v7, 0.0  ;;  %v559_v15 = vpack.c.bf16 %v549_v8, %v548_v12  ;;  %v532_v19 = vadd.f32 %v970_v9, %v841_v37 }
 0x1bc   : > { %v523_v13 = vpop.f32.mrf.mxu1 }
 0x1bd   : > { %v558_v14 = vpack.c.bf16 %v547_v11, %v546_v10  ;;  %v524_v17 = vadd.f32 %v841_v37, %v523_v13  ;;  %v552_v25 = vmax.f32 %v532_v19, 0.0 }
 0x1be   : > { %v971_v16 = vpop.f32.mrf.mxu1 }
 0x1bf   : > { %v535_v18 = vadd.f32 %v971_v16, %v841_v37  ;;  %996 = vmatprep.mubr.bf16.mxu0 %v558_v14  ;;  %v550_v23 = vmax.f32 %v524_v17, 0.0 }
 0x1c0   : > { %v526_v20 = vpop.f32.mrf.mxu1  ;;  %997 = vmatmul.mubr.bf16.gmra.mxu0 %v559_v15 }
 0x1c1   : > { %v527_v21 = vadd.f32 %v841_v37, %v526_v20  ;;  %v553_v22 = vmax.f32 %v535_v18, 0.0 }
 0x1c3   : > { %v551_v24 = vmax.f32 %v527_v21, 0.0  ;;  %v561_v27 = vpack.c.bf16 %v553_v22, %v552_v25 }
 0x1c5   : > { %v560_v26 = vpack.c.bf16 %v551_v24, %v550_v23 }
 0x1c7   : > { %1000 = vmatprep.mubr.bf16.mxu0 %v560_v26 }
 0x1c8   : > { %1001 = vmatmul.mubr.bf16.gmra.mxu0 %v561_v27 }
 0x270   : > { %v990_v29 = vpop.f32.mrf.mxu0 }
 0x271   : > { %v678_v30 = vadd.f32 %v990_v29, %v867_v28 }
 0x272   : > { %v669_v31 = vpop.f32.mrf.mxu0 }
 0x273   : > { %734 = vst [vmem:[%s1168_s13 + $0x10] sm:$0xff] %v678_v30  ;;  %v670_v32 = vadd.f32 %v867_v28, %v669_v31 }
 0x274   : > { %v991_v33 = vpop.f32.mrf.mxu0 }
 0x275   : > { %732 = vst [vmem:[%s1168_s13] sm:$0xff] %v670_v32  ;;  %v681_v34 = vadd.f32 %v991_v33, %v867_v28 }
 0x276   : > { %v672_v35 = vpop.f32.mrf.mxu0 }
 0x277   : > { %735 = vst [vmem:[%s1168_s13 + $0x18] sm:$0xff] %v681_v34  ;;  %v673_v36 = vadd.f32 %v867_v28, %v672_v35 }
 0x278   : > { %v994_v37 = vpop.f32.mrf.mxu0 }
 0x279   : > { %733 = vst [vmem:[%s1168_s13 + $0x8] sm:$0xff] %v673_v36  ;;  %v694_v38 = vadd.f32 %v994_v37, %v867_v28 }
 0x27a   : > { %v685_v39 = vpop.f32.mrf.mxu0 }
 0x27b   : > { %738 = vst [vmem:[%s1168_s13 + $0x30] sm:$0xff] %v694_v38  ;;  %v686_v40 = vadd.f32 %v867_v28, %v685_v39 }
 0x27c   : > { %v995_v41 = vpop.f32.mrf.mxu0 }
 0x27d   : > { %736 = vst [vmem:[%s1168_s13 + $0x20] sm:$0xff] %v686_v40  ;;  %v697_v42 = vadd.f32 %v995_v41, %v867_v28 }
 0x27e   : > { %v688_v43 = vpop.f32.mrf.mxu0 }
 0x27f   : > { %739 = vst [vmem:[%s1168_s13 + $0x38] sm:$0xff] %v697_v42  ;;  %v689_v44 = vadd.f32 %v867_v28, %v688_v43 }
 0x280   : > { %v998_v45 = vpop.f32.mrf.mxu0 }
 0x281   : > { %737 = vst [vmem:[%s1168_s13 + $0x28] sm:$0xff] %v689_v44  ;;  %v710_v46 = vadd.f32 %v998_v45, %v867_v28 }
 0x282   : > { %v701_v47 = vpop.f32.mrf.mxu0 }
 0x283   : > { %742 = vst [vmem:[%s1168_s13 + $0x50] sm:$0xff] %v710_v46  ;;  %v702_v48 = vadd.f32 %v867_v28, %v701_v47 }
 0x284   : > { %v999_v49 = vpop.f32.mrf.mxu0 }
 0x285   : > { %740 = vst [vmem:[%s1168_s13 + $0x40] sm:$0xff] %v702_v48  ;;  %v713_v50 = vadd.f32 %v999_v49, %v867_v28 }
 0x286   : > { %v704_v51 = vpop.f32.mrf.mxu0 }
 0x287   : > { %743 = vst [vmem:[%s1168_s13 + $0x58] sm:$0xff] %v713_v50  ;;  %v705_v52 = vadd.f32 %v867_v28, %v704_v51 }
 0x288   : > { %v1002_v53 = vpop.f32.mrf.mxu0 }
 0x289   : > { %741 = vst [vmem:[%s1168_s13 + $0x48] sm:$0xff] %v705_v52  ;;  %v726_v54 = vadd.f32 %v1002_v53, %v867_v28 }
 0x28a   : > { %v717_v55 = vpop.f32.mrf.mxu0 }
 0x28b   : > { %746 = vst [vmem:[%s1168_s13 + $0x70] sm:$0xff] %v726_v54  ;;  %v718_v56 = vadd.f32 %v867_v28, %v717_v55 }
 0x28c   : > { %v1003_v57 = vpop.f32.mrf.mxu0 }
 0x28d   : > { %744 = vst [vmem:[%s1168_s13 + $0x60] sm:$0xff] %v718_v56  ;;  %v729_v58 = vadd.f32 %v1003_v57, %v867_v28 }
 0x28e   : > { %v720_v59 = vpop.f32.mrf.mxu0 }
 0x28f   : > { %747 = vst [vmem:[%s1168_s13 + $0x78] sm:$0xff] %v729_v58  ;;  %v721_v60 = vadd.f32 %v867_v28, %v720_v59 }
 0x291   : > { %745 = vst [vmem:[%s1168_s13 + $0x68] sm:$0xff] %v721_v60 }
 0x292 PF: > { %s13_s12 = sadd.s32 1, %s1036_s12  }
 0x293   : > { %p10_p4 = scmp.ge.s32.totalorder %s13_s12, 6  }
 0x295   :  { %12 = sbr.rel (!%p10_p4) target bundleno = 1 (0x1), region = 66 }

</bundles_post_ra>
